<compile_context>
chip_gen: v7x
topology: tpu7x:2x2x1
jax: 0.10.0
libtpu: 0.0.40
codegen_flags: <defaults>
</compile_context>

<pallas_src>
import functools

import jax
import jax.numpy as jnp
from jax.experimental import pallas as pl
from jax.experimental.pallas import tpu as pltpu


def _round_up(a: int, b: int) -> int:
    return ((a + b - 1) // b) * b


def _unembed_kernel(x_ref, w_ref, b_ref, o_ref):
    # x_ref: (TM, D)    -- one M tile, full d_model (contraction in-kernel)
    # w_ref: (D, TN)    -- one vocab tile of W_U
    # b_ref: (1, TN)    -- matching bias tile
    # o_ref: (TM, TN)
    acc = jnp.dot(x_ref[...], w_ref[...], preferred_element_type=jnp.float32)
    o_ref[...] = (acc + b_ref[...].astype(jnp.float32)).astype(o_ref.dtype)


@functools.partial(jax.jit, static_argnames=("tile_m", "tile_n", "out_dtype"))
def unembed(x, W_U, b_U, *, tile_m=512, tile_n=512, out_dtype=None):
    """x: (batch, pos, d_model), W_U: (d_model, d_vocab), b_U: (d_vocab,)."""
    B, T, D = x.shape
    D2, V = W_U.shape
    assert D == D2
    out_dtype = x.dtype if out_dtype is None else jnp.dtype(out_dtype)

    M = B * T

    # Clamp tiles to the (aligned) problem size; keep (8, 128) alignment.
    tm = min(tile_m, _round_up(M, 8))
    tn = min(tile_n, _round_up(V, 128))

    # Pad M / V up to tile multiples (zero rows / zero vocab columns are
    # sliced off afterwards, so padding does not change results).
    Mp = _round_up(M, tm)
    Vp = _round_up(V, tn)

    x2d = x.reshape(M, D)
    if Mp != M:
        x2d = jnp.pad(x2d, ((0, Mp - M), (0, 0)))
    Wp = W_U if Vp == V else jnp.pad(W_U, ((0, 0), (0, Vp - V)))
    bp = b_U if Vp == V else jnp.pad(b_U, (0, Vp - V))
    b2d = bp.reshape(1, Vp)

    grid = (Mp // tm, Vp // tn)  # vocab axis innermost -> x tile reused

    # VMEM budget: double-buffered x / W / bias / output tiles (+50% slack).
    # Never set below the 32 MiB default; cap well under v7x's 64 MiB.
    bytes_x = tm * D * x2d.dtype.itemsize
    bytes_w = D * tn * Wp.dtype.itemsize
    bytes_b = 8 * tn * b2d.dtype.itemsize
    bytes_o = tm * tn * out_dtype.itemsize
    vmem_needed = 2 * (bytes_x + bytes_w + bytes_b + bytes_o)
    vmem_limit = int(min(100 * 1024 * 1024,
                         max(32 * 1024 * 1024, int(vmem_needed * 1.5))))

    cost = pl.CostEstimate(
        flops=2 * M * D * V,
        transcendentals=0,
        bytes_accessed=(x2d.size * x2d.dtype.itemsize
                        + Wp.size * Wp.dtype.itemsize
                        + b2d.size * b2d.dtype.itemsize
                        + Mp * Vp * out_dtype.itemsize),
    )

    out2d = pl.pallas_call(
        _unembed_kernel,
        out_shape=jax.ShapeDtypeStruct((Mp, Vp), out_dtype),
        grid_spec=pltpu.PrefetchScalarGridSpec(
            num_scalar_prefetch=0,
            grid=grid,
            in_specs=[
                # x tile: changes only with the (outer) M grid index, so it is
                # not re-fetched across the inner vocab loop.
                pl.BlockSpec((tm, D), lambda i, j: (i, 0)),
                # W_U vocab tile (streamed along the inner axis).
                pl.BlockSpec((D, tn), lambda i, j: (0, j)),
                # bias tile.
                pl.BlockSpec((1, tn), lambda i, j: (0, j)),
            ],
            out_specs=pl.BlockSpec((tm, tn), lambda i, j: (i, j)),
        ),
        compiler_params=pltpu.CompilerParams(
            dimension_semantics=("parallel", "parallel"),
            vmem_limit_bytes=vmem_limit,
        ),
        cost_estimate=cost,
    )(x2d, Wp, b2d)

    return out2d[:M, :V].reshape(B, T, V)


if __name__ == "__main__":
    # Small, shape-consistent config. seq=7 and d_vocab=300 deliberately
    # exercise the M / vocab padding paths.
    batch, seq, d_model, d_vocab = 2, 7, 32, 300
    init_range = 0.02

    key = jax.random.PRNGKey(0)
    k_x, k_w = jax.random.split(key)

    x = jax.random.normal(k_x, (batch, seq, d_model), dtype=jnp.float32)
    W_U = init_range * jax.random.normal(k_w, (d_model, d_vocab), dtype=jnp.float32)
    b_U = jnp.zeros((d_vocab,), dtype=jnp.float32)

    logits = unembed(x, W_U, b_U)
    jax.block_until_ready(logits)

    # Reference check against plain JAX einsum (same semantics as the
    # PyTorch module's forward).
    ref = jnp.einsum("btd,dv->btv", x, W_U) + b_U
    assert logits.shape == (batch, seq, d_vocab)
    assert jnp.allclose(logits, ref, atol=1e-4, rtol=1e-4)

    print("KERNEL_OK")
</pallas_src>

<mosaic_0001>
module attributes {stable_mosaic.version = 11 : i64} {
  func.func @_unembed_kernel(%arg0: i32, %arg1: i32, %arg2: memref<16x32xf32, #tpu.memory_space<vmem>>, %arg3: memref<32x384xf32, #tpu.memory_space<vmem>>, %arg4: memref<1x384xf32, #tpu.memory_space<vmem>>, %arg5: memref<16x384xf32, #tpu.memory_space<vmem>>) attributes {dimension_semantics = [#tpu.dimension_semantics<parallel>, #tpu.dimension_semantics<parallel>], iteration_bounds = array<i64: 1, 1>, scalar_prefetch = 0 : i64, scratch_operands = 0 : i64, tpu.core_type = #tpu.core_type<tc>, window_params = [{transform_indices = @transform_0, window_bounds = array<i64: 16, 32>}, {transform_indices = @transform_1, window_bounds = array<i64: 32, 384>}, {transform_indices = @transform_2, window_bounds = array<i64: 1, 384>}, {transform_indices = @transform_3, window_bounds = array<i64: 16, 384>}]} {
    %c0 = arith.constant 0 : index
    %c0_0 = arith.constant 0 : index
    %0 = vector.load %arg2[%c0, %c0_0] : memref<16x32xf32, #tpu.memory_space<vmem>>, vector<16x32xf32>
    %c0_1 = arith.constant 0 : index
    %c0_2 = arith.constant 0 : index
    %1 = vector.load %arg3[%c0_1, %c0_2] : memref<32x384xf32, #tpu.memory_space<vmem>>, vector<32x384xf32>
    %cst = arith.constant dense<0.000000e+00> : vector<16x384xf32>
    %2 = tpu.matmul %0, %1, %cst {dimension_numbers = #tpu.dot_dimension_numbers<[1], [0], [0], [1], [0, 0, 1, 1], [], []>} : vector<16x32xf32>, vector<32x384xf32>, vector<16x384xf32> -> vector<16x384xf32>
    %c0_3 = arith.constant 0 : index
    %c0_4 = arith.constant 0 : index
    %3 = vector.load %arg4[%c0_3, %c0_4] : memref<1x384xf32, #tpu.memory_space<vmem>>, vector<1x384xf32>
    %4 = vector.broadcast %3 : vector<1x384xf32> to vector<16x384xf32>
    %5 = arith.addf %2, %4 : vector<16x384xf32>
    %c0_5 = arith.constant 0 : index
    %c0_6 = arith.constant 0 : index
    %6 = vector.load %arg5[%c0_5, %c0_6] : memref<16x384xf32, #tpu.memory_space<vmem>>, vector<16x384xf32>
    tpu.vector_store %arg5[%c0_5, %c0_6], %5 {strides = array<i32>} : memref<16x384xf32, #tpu.memory_space<vmem>>, vector<16x384xf32>,
    return
  }
  func.func @transform_0(%arg0: i32, %arg1: i32) -> (i32, i32) {
    %c0_i32 = arith.constant 0 : i32
    %c0_i32_0 = arith.constant 0 : i32
    return %arg0, %c0_i32 : i32, i32
  }
  func.func @transform_1(%arg0: i32, %arg1: i32) -> (i32, i32) {
    %c0_i32 = arith.constant 0 : i32
    %c0_i32_0 = arith.constant 0 : i32
    return %c0_i32, %arg1 : i32, i32
  }
  func.func @transform_2(%arg0: i32, %arg1: i32) -> (i32, i32) {
    %c0_i32 = arith.constant 0 : i32
    %c0_i32_0 = arith.constant 0 : i32
    return %c0_i32, %arg1 : i32, i32
  }
  func.func @transform_3(%arg0: i32, %arg1: i32) -> (i32, i32) {
    %c0_i32 = arith.constant 0 : i32
    return %arg0, %arg1 : i32, i32
  }
}

</mosaic_0001>

<bundles_post_ra>
// kernel: unembed.1
= control target key start
LH: loop header
LB: loop body
LE: loop exit
PB: predicated region body
PF: predicated region fallthrough
CT: control target
= control target key end

     0   :  { %v252_v3 = vmov 0.0   ;;  %vm45_vm0 = vcmask 261120   ;;  %v30_v21 = vlaneseq  ;;  %s336_s1 = inlined_call_operand.vmem [shape: f32[32,384], index: 1, kind: input, shape index: {}]   ;;  %s337_s0 = inlined_call_operand.vmem [shape: f32[16,32], index: 0, kind: input, shape index: {}]   ;;  %s338_s2 = inlined_call_operand.vmem [shape: f32[1,384], index: 2, kind: input, shape index: {}]   ;;  %s339_s3 = inlined_call_operand.vmem [shape: f32[16,384], index: 3, kind: output, shape index: {}]  }
   0x1   :  { %v17_v0 = vld [vmem:[%s336_s1 + $0x8] sm:$0xff]  ;;  %v20_v1 = vld [vmem:[%s336_s1 + $0x20] sm:$0xff]  ;;  %116 = vmatprep.mubr.f32.mxu0 %v252_v3  ;;  %v19_v5 = vld [vmem:[%s336_s1 + $0x18] sm:$0xff] }
   0x2   :  { %v16_v2 = vld [vmem:[%s336_s1] sm:$0xff]  ;;  %v235_v4 = vpack.c.bf16 %v20_v1, %v17_v0  ;;  %v18_v6 = vld [vmem:[%s336_s1 + $0x10] sm:$0xff]  ;;  %v21_v7 = vld [vmem:[%s336_s1 + $0x28] sm:$0xff]  ;;  %v31_v22 = vshrl.u32 %v30_v21, 7 }
   0x3   :  { %v237_v8 = vpack.c.bf16 %v19_v5, %v16_v2  ;;  %v243_v9 = vpack.c.bf16 %v21_v7, %v18_v6  ;;  %v23_v10 = vld [vmem:[%s336_s1 + $0x38] sm:$0xff]  ;;  %v26_v11 = vld [vmem:[%s336_s1 + $0x50] sm:$0xff]  ;;  %v25_v14 = vld [vmem:[%s336_s1 + $0x48] sm:$0xff] }
   0x4   :  { %v22_v12 = vld [vmem:[%s336_s1 + $0x30] sm:$0xff]  ;;  %236 = vmatprep.subr.bf16.mxu0 %v235_v4  ;;  %v239_v13 = vpack.c.bf16 %v26_v11, %v23_v10  ;;  %v24_v15 = vld [vmem:[%s336_s1 + $0x40] sm:$0xff]  ;;  %v27_v16 = vld [vmem:[%s336_s1 + $0x58] sm:$0xff]  ;;  %v32_v23 = vsub.s32 0, %v31_v22  ;;  %v36_v25 = vsub.s32 1, %v31_v22  ;;  %v40_v26 = vsub.s32 2, %v31_v22 }
   0x5   :  { %238 = vmatpush1.bf16.msra.mxu0 %v237_v8  ;;  %244 = vmatprep.subr.bf16.mxu1 %v243_v9  ;;  %v241_v17 = vpack.c.bf16 %v25_v14, %v22_v12  ;;  %v247_v18 = vpack.c.bf16 %v27_v16, %v24_v15  ;;  %v14_v19 = vld [vmem:[%s337_s0] sm:$0xff]  ;;  %v15_v20 = vld [vmem:[%s337_s0 + $0x8] sm:$0xff] }
   0x6   :  { %240 = vmatprep.subr.bf16.mxu0 %v239_v13  ;;  %246 = vmatpush3.bf16.msra.mxu1 %v243_v9  ;;  %v28_v24 = vld [vmem:[%s338_s2] sm:$0x7] }
   0x7   :  { %248 = vmatprep.subr.bf16.mxu1 %v247_v18  ;;  %232 = vmatprep.mubr.msk.f32.mxu1 %vm45_vm0, %v14_v19  ;;  %v33_v27 = vrot.slane %v28_v24, %v32_v23  ;;  %v37_v28 = vrot.slane %v28_v24, %v36_v25  ;;  %v41_v29 = vrot.slane %v28_v24, %v40_v26 }
   0x9   :  { %242 = vmatpush1.bf16.msra.mxu0 %v241_v17 }
   0xa   :  { %250 = vmatpush3.bf16.msra.mxu1 %v247_v18 }
   0xc   :  { %214 = vmatmul.mubr.msk.f32.vlgmr.msra.gmra.mrb[0].mxu0 %vm45_vm0, %v14_v19 }
   0xd   :  { %122 = vmatprep.mubr.f32.mxu0 %v252_v3  ;;  %233 = vmatmul.mubr.msk.f32.vlgmr.msra.gmra.mrb[0].mxu1 %vm45_vm0, %v15_v20 }
  0x10   :  { %215 = vmatmul.mubr.msk.f32.gmra.mrb[2].mxu0 %vm45_vm0, %v15_v20 }
  0xdf   :  { %v118_v30 = vpop.f32.mrb[0].mxu0 }
  0xe0   :  { %v119_v31 = vadd.f32 %v118_v30, %v33_v27  ;;  %v120_v32 = vpop.f32.mrb[1].mxu0  ;;  %v234_v33 = vpop.f32.mrb[0].mxu1 }
  0xe1   :  { %v121_v34 = vadd.f32 %v120_v32, %v37_v28  ;;  %v201_v35 = vadd.f32 %v234_v33, %v41_v29  ;;  %v195_v36 = vpop.f32.mrb[1].mxu1 }
  0xe2   :  { %204 = vst [vmem:[%s339_s3] sm:$0xff] %v119_v31  ;;  %v196_v37 = vadd.f32 %v195_v36, %v41_v29 }
  0xe3   :  { %205 = vst [vmem:[%s339_s3 + $0x8] sm:$0xff] %v121_v34  ;;  %209 = vst [vmem:[%s339_s3 + $0x28] sm:$0xff] %v201_v35  ;;  %v124_v38 = vpop.f32.mrb[2].mxu0 }
  0xe4   :  { %v125_v39 = vadd.f32 %v124_v38, %v33_v27  ;;  %206 = vst [vmem:[%s339_s3 + $0x10] sm:$0xff] %v196_v37  ;;  %v126_v40 = vpop.f32.mrb[3].mxu0 }
  0xe5   :  { %v127_v41 = vadd.f32 %v126_v40, %v37_v28 }
  0xe6   :  { %207 = vst [vmem:[%s339_s3 + $0x18] sm:$0xff] %v125_v39 }
  0xe7   :  { %208 = vst [vmem:[%s339_s3 + $0x20] sm:$0xff] %v127_v41 }

</bundles_post_ra>
